<compile_context>
chip_gen: v6e
topology: v6e:2x2x1
jax: 0.10.0
libtpu: 0.0.40
codegen_flags: <defaults>
</compile_context>

<pallas_src>
import functools

import jax
import jax.numpy as jnp
import numpy as np
from jax.experimental import pallas as pl
from jax.experimental.pallas import tpu as pltpu


def _make_critic_kernel(compute_dtype):
    def critic_kernel(s_ref, so_ref, a_ref, ao_ref,
                      w1_ref, b1_ref, w2_ref, b2_ref, w3_ref, b3_ref,
                      out_ref, xpad_ref):
        S = s_ref.shape[1]
        A = a_ref.shape[1]

        # Fused concat + K-padding: assemble [TB, 128] padded input in VMEM.
        # Zeroing the whole scratch each step keeps the pad lanes exact zeros
        # regardless of grid iteration order / core sharding.
        xpad_ref[...] = jnp.zeros(xpad_ref.shape, xpad_ref.dtype)
        xpad_ref[:, 0:S] = s_ref[...]
        xpad_ref[:, S:2 * S] = so_ref[...]
        xpad_ref[:, 2 * S:2 * S + A] = a_ref[...]
        xpad_ref[:, 2 * S + A:2 * S + 2 * A] = ao_ref[...]

        x = xpad_ref[...].astype(compute_dtype)

        # fc1 + relu: single lane-aligned 128-K MXU matmul (zero rows of w1
        # match the zero pad lanes of x, so the result is exact).
        h1 = jnp.dot(x, w1_ref[...].astype(compute_dtype),
                     preferred_element_type=jnp.float32)
        h1 = jnp.maximum(h1 + b1_ref[...], 0.0)

        # fc2 + relu.
        h2 = jnp.dot(h1.astype(compute_dtype), w2_ref[...].astype(compute_dtype),
                     preferred_element_type=jnp.float32)
        h2 = jnp.maximum(h2 + b2_ref[...], 0.0)

        # fc3: out_features == 1 -> VPU multiply + lane reduction (XLU) instead
        # of a degenerate N=1 MXU pass; bias is a scalar read from SMEM.
        q = jnp.sum(h2 * w3_ref[...], axis=-1, keepdims=True) + b3_ref[0, 0]
        out_ref[...] = q.astype(out_ref.dtype)

    return critic_kernel


def critic_forward(state, state_opponent, action, action_opponent, params,
                   *, compute_dtype=jnp.float32, batch_tile=128):
    """Pallas critic forward. Returns Q-values of shape [B, 1] (float32)."""
    w1, b1, w2, b2, w3, b3 = params
    B, S = state.shape
    A = action.shape[1]
    K = w1.shape[0]        # padded contraction dim (128)
    H1 = w1.shape[1]       # fc1_units
    H2 = w2.shape[1]       # fc2_units
    assert 2 * (S + A) <= K, "w1 must be padded to cover the concatenated input"

    # One batch tile if B < batch_tile (the block then equals the full array dim,
    # which satisfies the (8,128) BlockSpec rule); otherwise tile by 128 rows.
    TB = batch_tile if B >= batch_tile else B
    grid = (pl.cdiv(B, TB),)

    xmap = lambda i: (i, 0)   # batch-tiled operands
    wmap = lambda i: (0, 0)   # weights: same block every step -> stay resident

    kernel = _make_critic_kernel(compute_dtype)

    return pl.pallas_call(
        kernel,
        out_shape=jax.ShapeDtypeStruct((B, 1), jnp.float32),
        grid=grid,
        in_specs=[
            pl.BlockSpec((TB, S), xmap),           # state
            pl.BlockSpec((TB, S), xmap),           # state_opponent
            pl.BlockSpec((TB, A), xmap),           # action
            pl.BlockSpec((TB, A), xmap),           # action_opponent
            pl.BlockSpec((K, H1), wmap),           # w1 (padded to [128, H1])
            pl.BlockSpec((1, H1), wmap),           # b1
            pl.BlockSpec((H1, H2), wmap),          # w2
            pl.BlockSpec((1, H2), wmap),           # b2
            pl.BlockSpec((1, H2), wmap),           # w3 as a row vector
            pl.BlockSpec(memory_space=pltpu.MemorySpace.SMEM),  # b3 scalar
        ],
        out_specs=pl.BlockSpec((TB, 1), xmap),
        scratch_shapes=[pltpu.VMEM((TB, K), jnp.float32)],      # padded x tile
        compiler_params=pltpu.CompilerParams(
            dimension_semantics=("parallel",)),    # megacore-shard batch on v7x
    )(state, state_opponent, action, action_opponent, w1, b1, w2, b2, w3, b3)


def init_critic_params(key, state_size, action_size, num_agents,
                       fc1_units=128, fc2_units=128, k_pad=128,
                       weight_dtype=jnp.float32):
    """Deterministic init mirroring the PyTorch module's reset_parameters().

    Note: hidden_init in the reference uses weight.size()[0] == out_features as
    'fan_in', so lim = 1/sqrt(out_features) — replicated faithfully here.
    w1 is zero-padded along the contraction dim to k_pad (=128) so the kernel's
    first matmul is lane-aligned; w3 is stored as a [1, fc2_units] row vector.
    """
    d_in = (state_size + action_size) * num_agents
    assert d_in <= k_pad
    k = jax.random.split(key, 6)

    lim1 = 1.0 / np.sqrt(fc1_units)   # reference quirk (out_features as fan_in)
    lim2 = 1.0 / np.sqrt(fc2_units)

    w1 = jax.random.uniform(k[0], (d_in, fc1_units), jnp.float32, -lim1, lim1)
    w1 = jnp.pad(w1, ((0, k_pad - d_in), (0, 0)))   # zero rows for padded lanes
    b1 = jax.random.uniform(k[1], (1, fc1_units), jnp.float32,
                            -1.0 / np.sqrt(d_in), 1.0 / np.sqrt(d_in))
    w2 = jax.random.uniform(k[2], (fc1_units, fc2_units), jnp.float32, -lim2, lim2)
    b2 = jax.random.uniform(k[3], (1, fc2_units), jnp.float32,
                            -1.0 / np.sqrt(fc1_units), 1.0 / np.sqrt(fc1_units))
    w3 = jax.random.uniform(k[4], (1, fc2_units), jnp.float32, -3e-3, 3e-3)
    b3 = jax.random.uniform(k[5], (1, 1), jnp.float32,
                            -1.0 / np.sqrt(fc2_units), 1.0 / np.sqrt(fc2_units))
    return (w1.astype(weight_dtype), b1, w2.astype(weight_dtype), b2, w3, b3)


def critic_reference(state, state_opponent, action, action_opponent, params):
    """Pure-JAX reference (same math as the PyTorch module)."""
    w1, b1, w2, b2, w3, b3 = params
    x = jnp.concatenate([state, state_opponent, action, action_opponent], axis=1)
    d_in = x.shape[1]
    h1 = jnp.maximum(x @ w1[:d_in].astype(jnp.float32) + b1, 0.0)
    h2 = jnp.maximum(h1 @ w2.astype(jnp.float32) + b2, 0.0)
    # fc3 with a single output unit == weighted sum + bias.
    return jnp.sum(h2 * w3, axis=-1, keepdims=True) + b3[0, 0]


if __name__ == "__main__":
    # Small MADDPG-like sizes: 2 agents, state=24, action=2, batch=8.
    state_size, action_size, num_agents = 24, 2, 2

    key = jax.random.PRNGKey(0)
    kp, kd = jax.random.split(key)
    params = init_critic_params(kp, state_size, action_size, num_agents)

    def make_inputs(k, batch):
        ks, kso, ka, kao = jax.random.split(k, 4)
        return (jax.random.normal(ks, (batch, state_size), jnp.float32),
                jax.random.normal(kso, (batch, state_size), jnp.float32),
                jax.random.normal(ka, (batch, action_size), jnp.float32),
                jax.random.normal(kao, (batch, action_size), jnp.float32))

    fwd = jax.jit(functools.partial(critic_forward, params=params))

    # --- small batch (single grid step, block == full batch) ---
    batch = 8
    s, so, a, ao = make_inputs(kd, batch)
    q = fwd(s, so, a, ao)
    jax.block_until_ready(q)
    q_ref = critic_reference(s, so, a, ao, params)
    np.testing.assert_allclose(np.asarray(q), np.asarray(q_ref),
                               rtol=1e-4, atol=1e-4)
    assert q.shape == (batch, 1) and q.dtype == jnp.float32

    # --- larger batch exercising the batch grid (2 tiles of 128 rows) ---
    batch2 = 256
    s2, so2, a2, ao2 = make_inputs(jax.random.PRNGKey(1), batch2)
    q2 = fwd(s2, so2, a2, ao2)
    jax.block_until_ready(q2)
    q2_ref = critic_reference(s2, so2, a2, ao2, params)
    np.testing.assert_allclose(np.asarray(q2), np.asarray(q2_ref),
                               rtol=1e-4, atol=1e-4)
    assert q2.shape == (batch2, 1) and q2.dtype == jnp.float32

    # TODO(synk): torch.manual_seed's exact RNG stream is not reproduced; init
    # matches the reference distributions (including the out_features-as-fan_in
    # quirk of hidden_init), not torch's bit-exact values.
    print("KERNEL_OK")
</pallas_src>

<mosaic_0001>
module attributes {stable_mosaic.version = 11 : i64} {
  func.func @critic_kernel(%arg0: i32, %arg1: memref<8x24xf32, #tpu.memory_space<vmem>>, %arg2: memref<8x24xf32, #tpu.memory_space<vmem>>, %arg3: memref<8x2xf32, #tpu.memory_space<vmem>>, %arg4: memref<8x2xf32, #tpu.memory_space<vmem>>, %arg5: memref<128x128xf32, #tpu.memory_space<vmem>>, %arg6: memref<1x128xf32, #tpu.memory_space<vmem>>, %arg7: memref<128x128xf32, #tpu.memory_space<vmem>>, %arg8: memref<1x128xf32, #tpu.memory_space<vmem>>, %arg9: memref<1x128xf32, #tpu.memory_space<vmem>>, %arg10: memref<1x1xf32, #tpu.memory_space<smem>>, %arg11: memref<8x1xf32, #tpu.memory_space<vmem>>, %arg12: memref<8x128xf32, #tpu.memory_space<vmem>>) attributes {dimension_semantics = [#tpu.dimension_semantics<parallel>], iteration_bounds = array<i64: 1>, scalar_prefetch = 0 : i64, scratch_operands = 1 : i64, tpu.core_type = #tpu.core_type<tc>, window_params = [{transform_indices = @transform_0, window_bounds = array<i64: 8, 24>}, {transform_indices = @transform_1, window_bounds = array<i64: 8, 24>}, {transform_indices = @transform_2, window_bounds = array<i64: 8, 2>}, {transform_indices = @transform_3, window_bounds = array<i64: 8, 2>}, {pipeline_mode = #tpu.pipeline_mode<synchronous>, transform_indices = @transform_4, window_bounds = array<i64: 128, 128>}, {pipeline_mode = #tpu.pipeline_mode<synchronous>, transform_indices = @transform_5, window_bounds = array<i64: 1, 128>}, {pipeline_mode = #tpu.pipeline_mode<synchronous>, transform_indices = @transform_6, window_bounds = array<i64: 128, 128>}, {pipeline_mode = #tpu.pipeline_mode<synchronous>, transform_indices = @transform_7, window_bounds = array<i64: 1, 128>}, {pipeline_mode = #tpu.pipeline_mode<synchronous>, transform_indices = @transform_8, window_bounds = array<i64: 1, 128>}, {transform_indices = @transform_9, window_bounds = array<i64: 1, 1>}, {transform_indices = @transform_10, window_bounds = array<i64: 8, 1>}]} {
    %cst = arith.constant 0.000000e+00 : f32
    %0 = vector.broadcast %cst : f32 to vector<8x128xf32>
    %c0 = arith.constant 0 : index
    %c0_0 = arith.constant 0 : index
    %1 = vector.load %arg12[%c0, %c0_0] : memref<8x128xf32, #tpu.memory_space<vmem>>, vector<8x128xf32>
    tpu.vector_store %arg12[%c0, %c0_0], %0 {strides = array<i32>} : memref<8x128xf32, #tpu.memory_space<vmem>>, vector<8x128xf32>,
    %c0_1 = arith.constant 0 : index
    %c0_2 = arith.constant 0 : index
    %2 = vector.load %arg1[%c0_1, %c0_2] : memref<8x24xf32, #tpu.memory_space<vmem>>, vector<8x24xf32>
    %c0_3 = arith.constant 0 : index
    %c0_4 = arith.constant 0 : index
    %3 = vector.load %arg12[%c0_3, %c0_4] : memref<8x128xf32, #tpu.memory_space<vmem>>, vector<8x24xf32>
    tpu.vector_store %arg12[%c0_3, %c0_4], %2 {strides = array<i32>} : memref<8x128xf32, #tpu.memory_space<vmem>>, vector<8x24xf32>,
    %c0_5 = arith.constant 0 : index
    %c0_6 = arith.constant 0 : index
    %4 = vector.load %arg2[%c0_5, %c0_6] : memref<8x24xf32, #tpu.memory_space<vmem>>, vector<8x24xf32>
    %c0_7 = arith.constant 0 : index
    %c24 = arith.constant 24 : index
    %5 = vector.load %arg12[%c0_7, %c24] : memref<8x128xf32, #tpu.memory_space<vmem>>, vector<8x24xf32>
    tpu.vector_store %arg12[%c0_7, %c24], %4 {strides = array<i32>} : memref<8x128xf32, #tpu.memory_space<vmem>>, vector<8x24xf32>,
    %c0_8 = arith.constant 0 : index
    %c0_9 = arith.constant 0 : index
    %6 = vector.load %arg3[%c0_8, %c0_9] : memref<8x2xf32, #tpu.memory_space<vmem>>, vector<8x2xf32>
    %c0_10 = arith.constant 0 : index
    %c48 = arith.constant 48 : index
    %7 = vector.load %arg12[%c0_10, %c48] : memref<8x128xf32, #tpu.memory_space<vmem>>, vector<8x2xf32>
    tpu.vector_store %arg12[%c0_10, %c48], %6 {strides = array<i32>} : memref<8x128xf32, #tpu.memory_space<vmem>>, vector<8x2xf32>,
    %c0_11 = arith.constant 0 : index
    %c0_12 = arith.constant 0 : index
    %8 = vector.load %arg4[%c0_11, %c0_12] : memref<8x2xf32, #tpu.memory_space<vmem>>, vector<8x2xf32>
    %c0_13 = arith.constant 0 : index
    %c50 = arith.constant 50 : index
    %9 = vector.load %arg12[%c0_13, %c50] : memref<8x128xf32, #tpu.memory_space<vmem>>, vector<8x2xf32>
    tpu.vector_store %arg12[%c0_13, %c50], %8 {strides = array<i32>} : memref<8x128xf32, #tpu.memory_space<vmem>>, vector<8x2xf32>,
    %c0_14 = arith.constant 0 : index
    %c0_15 = arith.constant 0 : index
    %10 = vector.load %arg12[%c0_14, %c0_15] : memref<8x128xf32, #tpu.memory_space<vmem>>, vector<8x128xf32>
    %c0_16 = arith.constant 0 : index
    %c0_17 = arith.constant 0 : index
    %11 = vector.load %arg5[%c0_16, %c0_17] : memref<128x128xf32, #tpu.memory_space<vmem>>, vector<128x128xf32>
    %cst_18 = arith.constant dense<0.000000e+00> : vector<8x128xf32>
    %12 = tpu.matmul %10, %11, %cst_18 {dimension_numbers = #tpu.dot_dimension_numbers<[1], [0], [0], [1], [0, 0, 1, 1], [], []>} : vector<8x128xf32>, vector<128x128xf32>, vector<8x128xf32> -> vector<8x128xf32>
    %c0_19 = arith.constant 0 : index
    %c0_20 = arith.constant 0 : index
    %13 = vector.load %arg6[%c0_19, %c0_20] : memref<1x128xf32, #tpu.memory_space<vmem>>, vector<1x128xf32>
    %14 = vector.broadcast %13 : vector<1x128xf32> to vector<8x128xf32>
    %15 = arith.addf %12, %14 : vector<8x128xf32>
    %cst_21 = arith.constant 0.000000e+00 : f32
    %16 = vector.broadcast %cst_21 : f32 to vector<8x128xf32>
    %17 = arith.maximumf %15, %16 : vector<8x128xf32>
    %c0_22 = arith.constant 0 : index
    %c0_23 = arith.constant 0 : index
    %18 = vector.load %arg7[%c0_22, %c0_23] : memref<128x128xf32, #tpu.memory_space<vmem>>, vector<128x128xf32>
    %cst_24 = arith.constant dense<0.000000e+00> : vector<8x128xf32>
    %19 = tpu.matmul %17, %18, %cst_24 {dimension_numbers = #tpu.dot_dimension_numbers<[1], [0], [0], [1], [0, 0, 1, 1], [], []>} : vector<8x128xf32>, vector<128x128xf32>, vector<8x128xf32> -> vector<8x128xf32>
    %c0_25 = arith.constant 0 : index
    %c0_26 = arith.constant 0 : index
    %20 = vector.load %arg8[%c0_25, %c0_26] : memref<1x128xf32, #tpu.memory_space<vmem>>, vector<1x128xf32>
    %21 = vector.broadcast %20 : vector<1x128xf32> to vector<8x128xf32>
    %22 = arith.addf %19, %21 : vector<8x128xf32>
    %cst_27 = arith.constant 0.000000e+00 : f32
    %23 = vector.broadcast %cst_27 : f32 to vector<8x128xf32>
    %24 = arith.maximumf %22, %23 : vector<8x128xf32>
    %c0_28 = arith.constant 0 : index
    %c0_29 = arith.constant 0 : index
    %25 = vector.load %arg9[%c0_28, %c0_29] : memref<1x128xf32, #tpu.memory_space<vmem>>, vector<1x128xf32>
    %26 = vector.broadcast %25 : vector<1x128xf32> to vector<8x128xf32>
    %27 = arith.mulf %24, %26 : vector<8x128xf32>
    %cst_30 = arith.constant dense<0.000000e+00> : vector<8xf32>
    %28 = vector.multi_reduction <add>, %27, %cst_30 [1] : vector<8x128xf32> to vector<8xf32>
    %29 = vector.shape_cast %28 : vector<8xf32> to vector<8x1xf32>
    %c0_31 = arith.constant 0 : index
    %c0_32 = arith.constant 0 : index
    %30 = memref.load %arg10[%c0_31, %c0_32] : memref<1x1xf32, #tpu.memory_space<smem>>
    %31 = vector.broadcast %30 : f32 to vector<8x1xf32>
    %32 = arith.addf %29, %31 : vector<8x1xf32>
    %c0_33 = arith.constant 0 : index
    %c0_34 = arith.constant 0 : index
    %33 = vector.load %arg11[%c0_33, %c0_34] : memref<8x1xf32, #tpu.memory_space<vmem>>, vector<8x1xf32>
    tpu.vector_store %arg11[%c0_33, %c0_34], %32 {strides = array<i32>} : memref<8x1xf32, #tpu.memory_space<vmem>>, vector<8x1xf32>,
    return
  }
  func.func @transform_0(%arg0: i32) -> (i32, i32) {
    %c0_i32 = arith.constant 0 : i32
    %c0_i32_0 = arith.constant 0 : i32
    return %arg0, %c0_i32 : i32, i32
  }
  func.func @transform_1(%arg0: i32) -> (i32, i32) {
    %c0_i32 = arith.constant 0 : i32
    %c0_i32_0 = arith.constant 0 : i32
    return %arg0, %c0_i32 : i32, i32
  }
  func.func @transform_2(%arg0: i32) -> (i32, i32) {
    %c0_i32 = arith.constant 0 : i32
    %c0_i32_0 = arith.constant 0 : i32
    return %arg0, %c0_i32 : i32, i32
  }
  func.func @transform_3(%arg0: i32) -> (i32, i32) {
    %c0_i32 = arith.constant 0 : i32
    %c0_i32_0 = arith.constant 0 : i32
    return %arg0, %c0_i32 : i32, i32
  }
  func.func @transform_4(%arg0: i32) -> (i32, i32) {
    %c0_i32 = arith.constant 0 : i32
    %c0_i32_0 = arith.constant 0 : i32
    %c0_i32_1 = arith.constant 0 : i32
    return %c0_i32, %c0_i32_0 : i32, i32
  }
  func.func @transform_5(%arg0: i32) -> (i32, i32) {
    %c0_i32 = arith.constant 0 : i32
    %c0_i32_0 = arith.constant 0 : i32
    %c0_i32_1 = arith.constant 0 : i32
    return %c0_i32, %c0_i32_0 : i32, i32
  }
  func.func @transform_6(%arg0: i32) -> (i32, i32) {
    %c0_i32 = arith.constant 0 : i32
    %c0_i32_0 = arith.constant 0 : i32
    %c0_i32_1 = arith.constant 0 : i32
    return %c0_i32, %c0_i32_0 : i32, i32
  }
  func.func @transform_7(%arg0: i32) -> (i32, i32) {
    %c0_i32 = arith.constant 0 : i32
    %c0_i32_0 = arith.constant 0 : i32
    %c0_i32_1 = arith.constant 0 : i32
    return %c0_i32, %c0_i32_0 : i32, i32
  }
  func.func @transform_8(%arg0: i32) -> (i32, i32) {
    %c0_i32 = arith.constant 0 : i32
    %c0_i32_0 = arith.constant 0 : i32
    %c0_i32_1 = arith.constant 0 : i32
    return %c0_i32, %c0_i32_0 : i32, i32
  }
  func.func @transform_9(%arg0: i32) -> (i32, i32) {
    %c0_i32 = arith.constant 0 : i32
    %c0_i32_0 = arith.constant 0 : i32
    %c0_i32_1 = arith.constant 0 : i32
    return %c0_i32, %c0_i32_0 : i32, i32
  }
  func.func @transform_10(%arg0: i32) -> (i32, i32) {
    %c0_i32 = arith.constant 0 : i32
    %c0_i32_0 = arith.constant 0 : i32
    return %arg0, %c0_i32 : i32, i32
  }
}

</mosaic_0001>

<bundles_post_ra>
// kernel: critic_forward.1
= control target key start
LH: loop header
LB: loop body
LE: loop exit
PB: predicated region body
PF: predicated region fallthrough
CT: control target
= control target key end

     0   :  { %16 = vsyncpa [#allocation5], 0  ;;  %s591_s0 = inlined_call_operand.vmem [shape: f32[8,24], index: 0, kind: input, shape index: {}]   ;;  %s592_s1 = inlined_call_operand.vmem [shape: f32[8,24], index: 1, kind: input, shape index: {}]   ;;  %s593_s2 = inlined_call_operand.vmem [shape: f32[8,2], index: 2, kind: input, shape index: {}]   ;;  %s594_s3 = inlined_call_operand.vmem [shape: f32[8,2], index: 3, kind: input, shape index: {}]   ;;  %s595_s4 = inlined_call_operand.hbm [shape: f32[128,128], index: 4, kind: input, shape index: {}]   ;;  %s596_s5 = inlined_call_operand.vmem [shape: f32[1,128], index: 5, kind: input, shape index: {}]   ;;  %s597_s6 = inlined_call_operand.hbm [shape: f32[128,128], index: 6, kind: input, shape index: {}]   ;;  %s598_s7 = inlined_call_operand.vmem [shape: f32[1,128], index: 7, kind: input, shape index: {}]   ;;  %s599_s8 = inlined_call_operand.vmem [shape: f32[1,128], index: 8, kind: input, shape index: {}]   ;;  %s600_s9 = inlined_call_operand.<no memory space> [shape: f32[1,1], index: 9, kind: input, shape index: {}]   ;;  %s601_s10 = inlined_call_operand.vmem [shape: f32[8,1], index: 10, kind: output, shape index: {}]  }
   0x1   :  { %17 = vsyncpa [#allocation7], 0  ;;  %s459_s13 = smov [#allocation4]  }
   0x2   :  { %s31_s14 = sshll.u32 %s459_s13, 4  ;;  %s32_s14 = int_to_ptr.vmem [resolvable:$true] %s31_s14 }
   0x3   :  { %s423_s15 = scalar_lea.vmem %s32_s14, 2048  ;;  %p428_p1 = scmp.lt.s32.totalorder %s32_s14, %s32_s14 }
   0x4   :  { %p424_p0 = scmp.ne.s32.totalorder %s32_s14, %s423_s15  ;;  %p429_p2 = scmp.lt.s32.totalorder %s423_s15, %s423_s15 }
   0x6   :  { %p430_p3 = por %p429_p2, %p428_p1 }
   0x8   :  { %p431_p4 = pnand %p430_p3, %p424_p0 }
   0xa   :  { %434 = shalt.err (!%p431_p4)
}
   0xb   :  { %s460_s16 = smov 128   ;;  %s461_s17 = smov 8  }
   0xc   :  { %37 = dma.hbm_to_vmem [thread:$0]  %s595_s4, 2048, %s32_s14, [#allocation5], %s460_s16, %s460_s16, %s461_s17  }
   0xd   :  { %s462_s20 = smov [#allocation6]  }
   0xe   :  { %s45_s21 = sshll.u32 %s462_s20, 4  ;;  %s46_s21 = int_to_ptr.vmem [resolvable:$true] %s45_s21 }
   0xf   :  { %s443_s22 = scalar_lea.vmem %s46_s21, 2048  ;;  %p448_p6 = scmp.lt.s32.totalorder %s46_s21, %s46_s21 }
  0x10   :  { %p444_p5 = scmp.ne.s32.totalorder %s46_s21, %s443_s22  ;;  %p449_p7 = scmp.lt.s32.totalorder %s443_s22, %s443_s22 }
  0x12   :  { %p450_p8 = por %p449_p7, %p448_p6 }
  0x14   :  { %p451_p9 = pnand %p450_p8, %p444_p5 }
  0x16   :  { %454 = shalt.err (!%p451_p9)
}
  0x17   :  { %51 = dma.hbm_to_vmem [thread:$0]  %s597_s6, 2048, %s46_s21, [#allocation7], %s460_s16, %s460_s16, %s461_s17  }
  0x18   :  { %455 = dma.done.wait [#allocation5], 2048  }
  0x19   :  { %456 = vsyncadd [#allocation5], 4294965248 }
  0x1a   :  { %457 = dma.done.wait [#allocation7], 2048  }
  0x1b   :  { %458 = vsyncadd [#allocation7], 4294965248  ;;  %v463_v0 = vmov 0.0   ;;  %vm464_vm0 = vmmov 0   ;;  %v68_v1 = vld [vmem:[%s592_s1] sm:$0xff]  ;;  %s465_s27 = smov 24   ;;  %v289_v53 = vstv %s600_s9 }
  0x1c   :  { %336 = vmatprep.subr.mxu0 %v463_v0  ;;  %64 = vst [vmem:[#allocation2] sm:$0xff] %v463_v0  ;;  %371 = vmatprep.subr.mxu1 %v463_v0  ;;  %v82_v2 = vld [vmem:[%s594_s3] sm:$0xff]  ;;  %s466_s28 = smov 50   ;;  %v104_v4 = vld [vmem:[#allocation4 + $0x70] sm:$0xff]  ;;  %vm66_vm1 = vcmask 195584   ;;  %v103_v6 = vld [vmem:[#allocation4 + $0x68] sm:$0xff] }
  0x1d   :  { %368 = vmatprep.mubr.msk.f32.mxu0 %vm464_vm0, %v463_v0  ;;  %403 = vmatprep.mubr.msk.f32.mxu1 %vm464_vm0, %v463_v0  ;;  %v105_v3 = vld [vmem:[#allocation4 + $0x78] sm:$0xff]  ;;  %s467_s3 = smov 48   ;;  %v102_v8 = vld [vmem:[#allocation4 + $0x60] sm:$0xff]  ;;  %v198_v11 = vld [vmem:[#allocation6 + $0x70] sm:$0xff]  ;;  %vm73_vm2 = vcmask 392384   ;;  %vm80_vm3 = vcmask 408960  }
  0x1e   :  { %70 = vrot.lane.b32.xlu0 %v68_v1, %s465_s27  ;;  %84 = vrot.lane.b32.xlu1 %v82_v2, %s466_s28  ;;  %v75_v5 = vld [vmem:[%s593_s2] sm:$0xff]  ;;  %v197_v12 = vld [vmem:[#allocation6 + $0x68] sm:$0xff]  ;;  %v100_v13 = vld [vmem:[#allocation4 + $0x50] sm:$0xff]  ;;  %vm87_vm4 = vcmask 425360   ;;  %vm291_vm5 = vcmask 7168  }
  0x1f   :  { %337 = vmatpush3.msra.mxu0 %v105_v3  ;;  %v65_v7 = vld [vmem:[%s591_s0] sm:$0xff]  ;;  %v196_v14 = vld [vmem:[#allocation6 + $0x60] sm:$0xff]  ;;  %v99_v15 = vld [vmem:[#allocation4 + $0x48] sm:$0xff] }
  0x20   :  { %338 = vmatprep.subr.mxu0 %v463_v0  ;;  %67 = vst.msk [vmem:[#allocation2] sm:$0xff] %vm66_vm1, %v65_v7  ;;  %v199_v9 = vld [vmem:[#allocation6 + $0x78] sm:$0xff]  ;;  %v98_v17 = vld [vmem:[#allocation4 + $0x40] sm:$0xff]  ;;  %v194_v18 = vld [vmem:[#allocation6 + $0x50] sm:$0xff] }
  0x21   :  { %339 = vmatpush3.msra.mxu0 %v104_v4  ;;  %v101_v10 = vld [vmem:[#allocation4 + $0x58] sm:$0xff]  ;;  %372 = vmatpush3.msra.mxu1 %v199_v9  ;;  %v193_v20 = vld [vmem:[#allocation6 + $0x48] sm:$0xff]  ;;  %v96_v21 = vld [vmem:[#allocation4 + $0x30] sm:$0xff] }
  0x22   :  { %77 = vrot.lane.b32.xlu0 %v75_v5, %s467_s3  ;;  %340 = vmatprep.subr.mxu0 %v463_v0  ;;  %v195_v16 = vld [vmem:[#allocation6 + $0x58] sm:$0xff]  ;;  %v192_v22 = vld [vmem:[#allocation6 + $0x40] sm:$0xff]  ;;  %v95_v23 = vld [vmem:[#allocation4 + $0x28] sm:$0xff] }
  0x23   :  { %341 = vmatpush3.msra.mxu0 %v103_v6  ;;  %373 = vmatprep.subr.mxu1 %v463_v0  ;;  %v97_v19 = vld [vmem:[#allocation4 + $0x38] sm:$0xff]  ;;  %v94_v25 = vld [vmem:[#allocation4 + $0x20] sm:$0xff]  ;;  %v190_v26 = vld [vmem:[#allocation6 + $0x30] sm:$0xff] }
  0x24   :  { %342 = vmatprep.subr.mxu0 %v463_v0  ;;  %374 = vmatpush3.msra.mxu1 %v198_v11  ;;  %v191_v24 = vld [vmem:[#allocation6 + $0x38] sm:$0xff]  ;;  %v189_v28 = vld [vmem:[#allocation6 + $0x28] sm:$0xff]  ;;  %v92_v29 = vld [vmem:[#allocation4 + $0x10] sm:$0xff] }
  0x25   :  { %343 = vmatpush3.msra.mxu0 %v102_v8  ;;  %375 = vmatprep.subr.mxu1 %v463_v0  ;;  %v93_v27 = vld [vmem:[#allocation4 + $0x18] sm:$0xff]  ;;  %v188_v30 = vld [vmem:[#allocation6 + $0x20] sm:$0xff]  ;;  %v91_v31 = vld [vmem:[#allocation4 + $0x8] sm:$0xff] }
  0x26   :  { %344 = vmatprep.subr.mxu0 %v463_v0  ;;  %376 = vmatpush3.msra.mxu1 %v197_v12  ;;  %v187_v32 = vld [vmem:[#allocation6 + $0x18] sm:$0xff]  ;;  %v90_v33 = vld [vmem:[#allocation4] sm:$0xff]  ;;  %v186_v38 = vld [vmem:[#allocation6 + $0x10] sm:$0xff] }
  0x27   :  { %345 = vmatpush3.msra.mxu0 %v101_v10  ;;  %377 = vmatprep.subr.mxu1 %v463_v0  ;;  %v185_v39 = vld [vmem:[#allocation6 + $0x8] sm:$0xff]  ;;  %v184_v40 = vld [vmem:[#allocation6] sm:$0xff]  ;;  %v299_v41 = vld [vmem:[%s596_s5] ss:$0 sm:$0xff] }
  0x28   :  { %346 = vmatprep.subr.mxu0 %v463_v0  ;;  %378 = vmatpush3.msra.mxu1 %v196_v14  ;;  %v300_v46 = vld [vmem:[%s598_s7] ss:$0 sm:$0xff] }
  0x29   :  { %347 = vmatpush3.msra.mxu0 %v100_v13  ;;  %379 = vmatprep.subr.mxu1 %v463_v0  ;;  %v301_v50 = vld [vmem:[%s599_s8] ss:$0 sm:$0xff] }
  0x2a   :  { %348 = vmatprep.subr.mxu0 %v463_v0  ;;  %380 = vmatpush3.msra.mxu1 %v195_v16 }
  0x2b   :  { %349 = vmatpush3.msra.mxu0 %v99_v15  ;;  %381 = vmatprep.subr.mxu1 %v463_v0 }
  0x2c   :  { %350 = vmatprep.subr.mxu0 %v463_v0  ;;  %382 = vmatpush3.msra.mxu1 %v194_v18 }
  0x2d   :  { %351 = vmatpush3.msra.mxu0 %v98_v17  ;;  %383 = vmatprep.subr.mxu1 %v463_v0 }
  0x2e   :  { %352 = vmatprep.subr.mxu0 %v463_v0  ;;  %384 = vmatpush3.msra.mxu1 %v193_v20 }
  0x2f   :  { %353 = vmatpush3.msra.mxu0 %v97_v19  ;;  %385 = vmatprep.subr.mxu1 %v463_v0 }
  0x30   :  { %354 = vmatprep.subr.mxu0 %v463_v0  ;;  %386 = vmatpush3.msra.mxu1 %v192_v22 }
  0x31   :  { %355 = vmatpush3.msra.mxu0 %v96_v21  ;;  %387 = vmatprep.subr.mxu1 %v463_v0 }
  0x32   :  { %356 = vmatprep.subr.mxu0 %v463_v0  ;;  %388 = vmatpush3.msra.mxu1 %v191_v24 }
  0x33   :  { %357 = vmatpush3.msra.mxu0 %v95_v23  ;;  %389 = vmatprep.subr.mxu1 %v463_v0 }
  0x34   :  { %358 = vmatprep.subr.mxu0 %v463_v0  ;;  %390 = vmatpush3.msra.mxu1 %v190_v26 }
  0x35   :  { %359 = vmatpush3.msra.mxu0 %v94_v25  ;;  %391 = vmatprep.subr.mxu1 %v463_v0 }
  0x36   :  { %360 = vmatprep.subr.mxu0 %v463_v0  ;;  %392 = vmatpush3.msra.mxu1 %v189_v28 }
  0x37   :  { %361 = vmatpush3.msra.mxu0 %v93_v27  ;;  %393 = vmatprep.subr.mxu1 %v463_v0 }
  0x38   :  { %362 = vmatprep.subr.mxu0 %v463_v0  ;;  %394 = vmatpush3.msra.mxu1 %v188_v30 }
  0x39   :  { %363 = vmatpush3.msra.mxu0 %v92_v29  ;;  %395 = vmatprep.subr.mxu1 %v463_v0 }
  0x3a   :  { %364 = vmatprep.subr.mxu0 %v463_v0  ;;  %396 = vmatpush3.msra.mxu1 %v187_v32 }
  0x3b   :  { %365 = vmatpush3.msra.mxu0 %v91_v31  ;;  %397 = vmatprep.subr.mxu1 %v463_v0 }
  0x3c   :  { %366 = vmatprep.subr.mxu0 %v463_v0  ;;  %398 = vmatpush3.msra.mxu1 %v186_v38 }
  0x3d   :  { %367 = vmatpush3.msra.mxu0 %v90_v33  ;;  %399 = vmatprep.subr.mxu1 %v463_v0 }
  0x3e   :  { %400 = vmatpush3.msra.mxu1 %v185_v39 }
  0x3f   :  { %401 = vmatprep.subr.mxu1 %v463_v0 }
  0x40   :  { %402 = vmatpush3.msra.mxu1 %v184_v40 }
  0x90   :  { %v71_v34 = vpop.permute.xlu0 %70  ;;  %v85_v35 = vpop.permute.xlu1 %84 }
  0x91   :  { %74 = vst.msk [vmem:[#allocation2] sm:$0xff] %vm73_vm2, %v71_v34 }
  0x94   :  { %v78_v36 = vpop.permute.xlu0 %77 }
  0x95   :  { %81 = vst.msk [vmem:[#allocation2] sm:$0xff] %vm80_vm3, %v78_v36 }
  0x96   :  { %88 = vst.msk [vmem:[#allocation2] sm:$0xff] %vm87_vm4, %v85_v35 }
  0x9d   :  { %v89_v37 = vld [vmem:[#allocation2] sm:$0xff] }
  0x9e   :  { %369 = vmatmul.mubr.f32.vlgmr.msra.gmra.mxu0 %v89_v37 }
 0x15e   :  { %v179_v42 = vpop.f32.mrf.mxu0 }
 0x15f   :  { %v180_v43 = vadd.f32 %v299_v41, %v179_v42 }
 0x160   :  { %v370_v44 = vpop.f32.mrf.mxu0 }
 0x161   :  { %v183_v45 = vmax.f32 %v180_v43, 0.0 }
 0x163   :  { %404 = vmatmul.mubr.f32.vlgmr.msra.gmra.mxu1 %v183_v45 }
 0x223   :  { %v273_v47 = vpop.f32.mrf.mxu1 }
 0x224   :  { %v274_v48 = vadd.f32 %v300_v46, %v273_v47 }
 0x225   :  { %v405_v49 = vpop.f32.mrf.mxu1 }
 0x226   :  { %v277_v51 = vmax.f32 %v274_v48, 0.0 }
 0x228   :  { %v285_v52 = vmul.f32 %v301_v50, %v277_v51 }
 0x22a   :  { %286 = vadd.xlane.f32.xlu1 %v285_v52 }
 0x2b3   :  { %v287_v54 = vpop.xlane.xlu1 %286 }
 0x2b4   :  { %v290_v55 = vadd.f32 %v289_v53, %v287_v54 }
 0x2b6   :  { %292 = vst.msk [vmem:[%s601_s10] sm:$0xff] %vm291_vm5, %v290_v55 }
 0x2b7   :  { %297 = vsyncpa [#allocation5], 1 }
 0x2b8   :  { %298 = vsyncpa [#allocation7], 1 }

</bundles_post_ra>
